<compile_context>
chip_gen: v7x
topology: tpu7x:2x2x1
jax: 0.10.0
libtpu: 0.0.40
codegen_flags: <defaults>
</compile_context>

<pallas_src>
import math
import functools

import jax
import jax.numpy as jnp
from jax import lax
from jax.experimental import pallas as pl
from jax.experimental.pallas import tpu as pltpu


# ----------------------------------------------------------------------------
# VMEM budgets (generation aware: v5e/v6e 128 MiB, v7x 64 MiB per TensorCore)
# ----------------------------------------------------------------------------
def _vmem_capacity_bytes():
    try:
        return int(pltpu.get_tpu_info().vmem_capacity_bytes)
    except Exception:
        return 64 * 1024 * 1024   # conservative fallback (v7x per-core size)


def _vmem_limit_bytes(cap=None):
    cap = _vmem_capacity_bytes() if cap is None else cap
    # Raise v5e's 16 MiB scoped default; stay well inside v7x's 64 MiB physical.
    return max(32 * 1024 * 1024, min((cap * 3) // 4, 48 * 1024 * 1024))


# ----------------------------------------------------------------------------
# Kernel 1: weight-resident fused linear projection(s)
#   y_i = x @ W_i + b_i for one or more (W_i, b_i); x is streamed once, each
#   weight is DMA'd once (constant index_map), grid only over rows of x.
# ----------------------------------------------------------------------------
def _fused_linear_kernel(*refs, n_out):
    x_ref = refs[0]
    w_refs = refs[1:1 + n_out]
    b_refs = refs[1 + n_out:1 + 2 * n_out]
    o_refs = refs[1 + 2 * n_out:]
    x = x_ref[...].astype(jnp.bfloat16)            # cast in-kernel (x read once)
    for w_ref, b_ref, o_ref in zip(w_refs, b_refs, o_refs):
        acc = jnp.dot(x, w_ref[...], preferred_element_type=jnp.float32)
        o_ref[...] = (acc + b_ref[...]).astype(o_ref.dtype)


def _pick_m_tile(M, K, out_ns, x_bytes, budget, target=512):
    """Largest row tile (multiple of 256 > 128 > 8, divisor of M) whose
    weight-resident working set fits the VMEM budget."""
    def fits(tm):
        resident = sum(K * n * 2 for n in out_ns) + sum(4 * n for n in out_ns)
        per_step = 2 * (tm * K * x_bytes + sum(tm * n * 2 for n in out_ns))
        f32_tmp = tm * max(out_ns) * 4
        return resident + per_step + f32_tmp <= budget

    if M <= target:
        return M                                    # full dim: always tiling-legal
    cands = [t for t in range(min(M, target), 7, -1)
             if M % t == 0 and t % 8 == 0]
    for align in (256, 128, 8):                     # MXU-friendly tiles first
        for t in cands:
            if t % align == 0 and fits(t):
                return t
    return cands[-1] if cands else M


def fused_linear(x2d, weights, biases, out_dtype=jnp.bfloat16):
    """x2d: (M, K); weights: list of (K, Ni) bf16; biases: list of (Ni,) f32.
    Returns a tuple of (M, Ni) arrays in out_dtype."""
    # TODO(synk): weights larger than the VMEM budget would need a K-tiled
    #             accumulator variant; all BERT-class sizes fit resident.
    M, K = x2d.shape
    n_out = len(weights)
    out_ns = [w.shape[1] for w in weights]
    cap = _vmem_capacity_bytes()
    limit = _vmem_limit_bytes(cap)
    tm = _pick_m_tile(M, K, out_ns, x2d.dtype.itemsize, (limit * 3) // 4)
    b2d = [b.reshape(1, -1).astype(jnp.float32) for b in biases]

    in_specs = [pl.BlockSpec((tm, K), lambda i: (i, 0))]
    in_specs += [pl.BlockSpec((K, n), lambda i: (0, 0)) for n in out_ns]
    in_specs += [pl.BlockSpec((1, n), lambda i: (0, 0)) for n in out_ns]
    out_specs = tuple(pl.BlockSpec((tm, n), lambda i: (i, 0)) for n in out_ns)
    out_shape = tuple(jax.ShapeDtypeStruct((M, n), out_dtype) for n in out_ns)

    return pl.pallas_call(
        functools.partial(_fused_linear_kernel, n_out=n_out),
        out_shape=out_shape,
        grid_spec=pltpu.PrefetchScalarGridSpec(
            num_scalar_prefetch=0,
            grid=(M // tm,),
            in_specs=in_specs,
            out_specs=out_specs,
        ),
        compiler_params=pltpu.CompilerParams(
            dimension_semantics=("parallel",),
            vmem_limit_bytes=limit),
    )(x2d, *weights, *b2d)


# ----------------------------------------------------------------------------
# Kernel 2: per-batch, per-head-group attention.
#   Q/K/V arrive in natural (B, S, all_head) layout; the head group is picked
#   by the BlockSpec column block and per-head (S, d) tiles are static lane
#   slices, so no transposes are needed anywhere (in XLA or in-kernel).
# ----------------------------------------------------------------------------
def _attention_kernel(q_ref, k_ref, v_ref, amask_ref, tmask_ref,
                      out_ref, probs_ref=None, *, head_dim, group):
    amask = amask_ref[0, 0]                  # (1, Sk)  additive, f32
    tmask = tmask_ref[0]                     # (Sq, 1)  multiplicative, f32
    for h in range(group):                   # static unroll over heads in group
        lo = h * head_dim
        hi = lo + head_dim
        q_h = q_ref[0, :, lo:hi]             # (Sq, d) bf16, 1/sqrt(d) in W_q
        k_h = k_ref[0, :, lo:hi]             # (Sk, d) bf16
        v_h = v_ref[0, :, lo:hi]             # (Sk, d) bf16

        # scores = Q @ K^T: contract on the minor dim (no transpose), f32 acc.
        s = lax.dot_general(q_h, k_h, (((1,), (1,)), ((), ())),
                            preferred_element_type=jnp.float32)   # (Sq, Sk)
        s = s + amask

        # softmax in f32 (exp on EUP, approx reciprocal on EUP)
        m = jnp.max(s, axis=-1, keepdims=True)
        e = jnp.exp(s - m)
        p = e * pl.reciprocal(jnp.sum(e, axis=-1, keepdims=True), approx=True)

        # query mask applied before the single bf16 cast, which is reused for
        # both the PV matmul and the probs writeback (reference order).
        # Dropout: identity (eval / p=0).
        p_bf = (p * tmask).astype(jnp.bfloat16)

        if probs_ref is not None:
            probs_ref[0, h] = p_bf.astype(probs_ref.dtype)

        ctx_h = jnp.dot(p_bf, v_h, preferred_element_type=jnp.float32)  # (Sq,d)
        # Per-head lane-slice store (sub-128 masked vst into the VMEM block);
        # the HBM writeback of the (1, Sq, G*d) block stays fully dense.
        out_ref[0, :, lo:hi] = ctx_h.astype(out_ref.dtype)


def _pick_head_group(num_heads, head_dim, all_head, sq, sk, batch,
                     write_probs, budget_bytes):
    """Largest head-group G (divisor of num_heads, lane-dense G*d) whose
    working set (incl. f32 softmax intermediates) fits the VMEM budget."""
    legal, feasible = [], []
    for g in range(1, num_heads + 1):
        if num_heads % g:
            continue
        gd = g * head_dim
        if gd % 128 != 0 and gd != all_head:
            continue                          # keep tiling-legal, lane-dense blocks
        legal.append(g)
        per_step = (
            2 * (sq * gd * 2                  # q in   (bf16, double buffered)
                 + 2 * sk * gd * 2            # k, v in
                 + sq * gd * 2                # ctx out
                 + (g * sq * sk * 2 if write_probs else 0)   # probs out
                 + (sq + sk) * 4)             # masks
            + 3 * sq * sk * 4                 # live f32 softmax intermediates
        )
        if per_step <= budget_bytes:
            feasible.append(g)
    if not legal:
        return num_heads
    if not feasible:
        return min(legal)
    # Keep >= 2 parallel grid steps when possible so both v7x TCs get work.
    pref = [g for g in feasible if batch * (num_heads // g) >= 2]
    return max(pref or feasible)


def attention(q, k, v, attention_mask, tmask, *, num_heads, return_probs=True,
              out_dtype=jnp.bfloat16, probs_dtype=jnp.bfloat16):
    """
    q: (B, Sq, AH) bf16, k, v: (B, Sk, AH) bf16   (AH = num_heads * head_dim)
    attention_mask: (B, 1, 1, Sk) f32 additive
    tmask:          (B, Sq, 1)    f32 multiplicative
    Returns context (B, Sq, AH) out_dtype and probs (B, nh, Sq, Sk) | None.
    """
    B, Sq, AH = q.shape
    Sk = k.shape[1]
    d = AH // num_heads
    cap = _vmem_capacity_bytes()
    limit = _vmem_limit_bytes(cap)
    G = _pick_head_group(num_heads, d, AH, Sq, Sk, B, return_probs,
                         (limit * 3) // 4)
    GD = G * d

    out_shape = [jax.ShapeDtypeStruct((B, Sq, AH), out_dtype)]
    out_specs = [pl.BlockSpec((1, Sq, GD), lambda b, g: (b, 0, g))]
    if return_probs:
        out_shape.append(jax.ShapeDtypeStruct((B, num_heads, Sq, Sk),
                                              probs_dtype))
        out_specs.append(pl.BlockSpec((1, G, Sq, Sk),
                                      lambda b, g: (b, g, 0, 0)))

    results = pl.pallas_call(
        functools.partial(_attention_kernel, head_dim=d, group=G),
        out_shape=tuple(out_shape),
        grid_spec=pltpu.PrefetchScalarGridSpec(
            num_scalar_prefetch=0,
            grid=(B, num_heads // G),
            in_specs=[
                pl.BlockSpec((1, Sq, GD), lambda b, g: (b, 0, g)),
                pl.BlockSpec((1, Sk, GD), lambda b, g: (b, 0, g)),
                pl.BlockSpec((1, Sk, GD), lambda b, g: (b, 0, g)),
                pl.BlockSpec((1, 1, 1, Sk), lambda b, g: (b, 0, 0, 0)),
                pl.BlockSpec((1, Sq, 1), lambda b, g: (b, 0, 0)),
            ],
            out_specs=tuple(out_specs),
        ),
        compiler_params=pltpu.CompilerParams(
            dimension_semantics=("parallel", "parallel"),
            vmem_limit_bytes=limit),
    )(q, k, v, attention_mask, tmask)

    if return_probs:
        return results[0], results[1]
    return results[0], None


# ----------------------------------------------------------------------------
# Module wrapper (all glue is free reshapes; no transposes, no slices)
# ----------------------------------------------------------------------------
class BertAttentionPallas:
    def __init__(self, hidden_size, num_heads, ctx_dim=None, key=None,
                 out_dtype=jnp.bfloat16, probs_dtype=jnp.bfloat16):
        if hidden_size % num_heads != 0:
            raise ValueError(
                "The hidden size (%d) is not a multiple of the number of "
                "attention heads (%d)" % (hidden_size, num_heads))
        self.hidden_size = hidden_size
        self.num_heads = num_heads
        self.head_dim = hidden_size // num_heads
        self.all_head_size = num_heads * self.head_dim
        self.out_dtype = out_dtype
        self.probs_dtype = probs_dtype
        ctx_dim = hidden_size if ctx_dim is None else ctx_dim

        key = jax.random.PRNGKey(0) if key is None else key
        ks = jax.random.split(key, 6)
        s_q = 1.0 / math.sqrt(hidden_size)
        s_kv = 1.0 / math.sqrt(ctx_dim)
        AH = self.all_head_size
        scale = 1.0 / math.sqrt(self.head_dim)
        # nn.Linear weight is [out, in]; store transposed [in, out], bf16 for
        # the MXU.  1/sqrt(head_dim) is folded into the query projection in
        # f32 at init (exact, zero runtime cost).
        w_q = jax.random.uniform(ks[0], (hidden_size, AH), jnp.float32, -s_q, s_q)
        b_q = jax.random.uniform(ks[1], (AH,), jnp.float32, -s_q, s_q)
        self.w_q = (w_q * scale).astype(jnp.bfloat16)
        self.b_q = b_q * scale
        self.w_k = jax.random.uniform(ks[2], (ctx_dim, AH), jnp.float32,
                                      -s_kv, s_kv).astype(jnp.bfloat16)
        self.b_k = jax.random.uniform(ks[3], (AH,), jnp.float32, -s_kv, s_kv)
        self.w_v = jax.random.uniform(ks[4], (ctx_dim, AH), jnp.float32,
                                      -s_kv, s_kv).astype(jnp.bfloat16)
        self.b_v = jax.random.uniform(ks[5], (AH,), jnp.float32, -s_kv, s_kv)

    def __call__(self, hidden_states, context, attention_mask=None,
                 tmp_att_mask=None, return_probs=True):
        B, Sq, _ = hidden_states.shape
        Sk = context.shape[1]
        AH = self.all_head_size

        x_q = hidden_states.reshape(B * Sq, -1)
        x_kv = context.reshape(B * Sk, -1)
        (q,) = fused_linear(x_q, [self.w_q], [self.b_q])
        k, v = fused_linear(x_kv, [self.w_k, self.w_v], [self.b_k, self.b_v])
        q = q.reshape(B, Sq, AH)
        k = k.reshape(B, Sk, AH)
        v = v.reshape(B, Sk, AH)

        if attention_mask is None:
            attention_mask = jnp.zeros((B, 1, 1, Sk), jnp.float32)
        if tmp_att_mask is None:
            tmp_att_mask = jnp.ones((B, Sq), jnp.float32)
        amask = attention_mask.astype(jnp.float32)
        tmask = tmp_att_mask.astype(jnp.float32).reshape(B, Sq, 1)

        context_layer, probs = attention(
            q, k, v, amask, tmask, num_heads=self.num_heads,
            return_probs=return_probs, out_dtype=self.out_dtype,
            probs_dtype=self.probs_dtype)
        return context_layer, probs


# ----------------------------------------------------------------------------
# Pure-JAX (f32) reference for sanity check
# ----------------------------------------------------------------------------
def reference(mod, hidden_states, context, attention_mask, tmp_att_mask):
    B, Sq, _ = hidden_states.shape
    Sk = context.shape[1]
    nh, d = mod.num_heads, mod.head_dim
    # 1/sqrt(d) is already folded into w_q / b_q, so no extra score scaling.
    q = hidden_states @ mod.w_q.astype(jnp.float32) + mod.b_q
    k = context @ mod.w_k.astype(jnp.float32) + mod.b_k
    v = context @ mod.w_v.astype(jnp.float32) + mod.b_v
    q = q.reshape(B, Sq, nh, d).transpose(0, 2, 1, 3)
    k = k.reshape(B, Sk, nh, d).transpose(0, 2, 1, 3)
    v = v.reshape(B, Sk, nh, d).transpose(0, 2, 1, 3)
    scores = jnp.einsum("bhqd,bhkd->bhqk", q, k) + attention_mask
    probs = jax.nn.softmax(scores, axis=-1)
    probs = probs * tmp_att_mask[:, None, :, None]
    ctx = jnp.einsum("bhqk,bhkd->bhqd", probs, v)
    ctx = ctx.transpose(0, 2, 1, 3).reshape(B, Sq, nh * d)
    return ctx, probs


if __name__ == "__main__":
    B, Sq, Sk = 2, 8, 8
    hidden_size, num_heads = 32, 4

    key = jax.random.PRNGKey(0)
    k1, k2, k3, k4, k5 = jax.random.split(key, 5)
    hidden_states = jax.random.normal(k1, (B, Sq, hidden_size), jnp.float32)
    context = jax.random.normal(k2, (B, Sk, hidden_size), jnp.float32)
    # additive mask: 0 for keep, -10000 for masked-out positions
    amask_bits = (jax.random.uniform(k3, (B, 1, 1, Sk)) > 0.2).astype(jnp.float32)
    attention_mask = (1.0 - amask_bits) * -10000.0
    tmp_att_mask = (jax.random.uniform(k4, (B, Sq)) > 0.1).astype(jnp.float32)

    mod = BertAttentionPallas(hidden_size, num_heads, key=k5)

    ctx_out, probs_out = mod(hidden_states, context, attention_mask,
                             tmp_att_mask)
    jax.block_until_ready((ctx_out, probs_out))

    ctx_exp, probs_exp = reference(mod, hidden_states, context,
                                   attention_mask, tmp_att_mask)

    assert ctx_out.shape == (B, Sq, hidden_size)
    assert probs_out.shape == (B, num_heads, Sq, Sk)
    # bf16 MXU inputs + bf16 outputs -> loosened parity tolerances.
    assert jnp.allclose(ctx_out.astype(jnp.float32), ctx_exp,
                        atol=5e-2, rtol=5e-2)
    assert jnp.allclose(probs_out.astype(jnp.float32), probs_exp,
                        atol=5e-2, rtol=5e-2)

    print("KERNEL_OK")
</pallas_src>

<mosaic_0001>
module attributes {stable_mosaic.version = 11 : i64} {
  func.func @_fused_linear_kernel(%arg0: i32, %arg1: memref<16x32xf32, #tpu.memory_space<vmem>>, %arg2: memref<32x32xbf16, #tpu.memory_space<vmem>>, %arg3: memref<1x32xf32, #tpu.memory_space<vmem>>, %arg4: memref<16x32xbf16, #tpu.memory_space<vmem>>) attributes {dimension_semantics = [#tpu.dimension_semantics<parallel>], iteration_bounds = array<i64: 1>, scalar_prefetch = 0 : i64, scratch_operands = 0 : i64, tpu.core_type = #tpu.core_type<tc>, window_params = [{transform_indices = @transform_0, window_bounds = array<i64: 16, 32>}, {pipeline_mode = #tpu.pipeline_mode<synchronous>, transform_indices = @transform_1, window_bounds = array<i64: 32, 32>}, {pipeline_mode = #tpu.pipeline_mode<synchronous>, transform_indices = @transform_2, window_bounds = array<i64: 1, 32>}, {transform_indices = @transform_3, window_bounds = array<i64: 16, 32>}]} {
    %c0 = arith.constant 0 : index
    %c0_0 = arith.constant 0 : index
    %0 = vector.load %arg1[%c0, %c0_0] : memref<16x32xf32, #tpu.memory_space<vmem>>, vector<16x32xf32>
    %1 = arith.truncf %0 : vector<16x32xf32> to vector<16x32xbf16>
    %c0_1 = arith.constant 0 : index
    %c0_2 = arith.constant 0 : index
    %2 = vector.load %arg2[%c0_1, %c0_2] : memref<32x32xbf16, #tpu.memory_space<vmem>>, vector<32x32xbf16>
    %cst = arith.constant dense<0.000000e+00> : vector<16x32xf32>
    %3 = tpu.matmul %1, %2, %cst {dimension_numbers = #tpu.dot_dimension_numbers<[1], [0], [0], [1], [0, 0, 1, 1], [], []>} : vector<16x32xbf16>, vector<32x32xbf16>, vector<16x32xf32> -> vector<16x32xf32>
    %c0_3 = arith.constant 0 : index
    %c0_4 = arith.constant 0 : index
    %4 = vector.load %arg3[%c0_3, %c0_4] : memref<1x32xf32, #tpu.memory_space<vmem>>, vector<1x32xf32>
    %5 = vector.broadcast %4 : vector<1x32xf32> to vector<16x32xf32>
    %6 = arith.addf %3, %5 : vector<16x32xf32>
    %7 = arith.truncf %6 : vector<16x32xf32> to vector<16x32xbf16>
    %c0_5 = arith.constant 0 : index
    %c0_6 = arith.constant 0 : index
    %8 = vector.load %arg4[%c0_5, %c0_6] : memref<16x32xbf16, #tpu.memory_space<vmem>>, vector<16x32xbf16>
    tpu.vector_store %arg4[%c0_5, %c0_6], %7 {strides = array<i32>} : memref<16x32xbf16, #tpu.memory_space<vmem>>, vector<16x32xbf16>,
    return
  }
  func.func @transform_0(%arg0: i32) -> (i32, i32) {
    %c0_i32 = arith.constant 0 : i32
    %c0_i32_0 = arith.constant 0 : i32
    return %arg0, %c0_i32 : i32, i32
  }
  func.func @transform_1(%arg0: i32) -> (i32, i32) {
    %c0_i32 = arith.constant 0 : i32
    %c0_i32_0 = arith.constant 0 : i32
    %c0_i32_1 = arith.constant 0 : i32
    return %c0_i32, %c0_i32_0 : i32, i32
  }
  func.func @transform_2(%arg0: i32) -> (i32, i32) {
    %c0_i32 = arith.constant 0 : i32
    %c0_i32_0 = arith.constant 0 : i32
    %c0_i32_1 = arith.constant 0 : i32
    return %c0_i32, %c0_i32_0 : i32, i32
  }
  func.func @transform_3(%arg0: i32) -> (i32, i32) {
    %c0_i32 = arith.constant 0 : i32
    %c0_i32_0 = arith.constant 0 : i32
    return %arg0, %c0_i32 : i32, i32
  }
}

</mosaic_0001>

<bundles_post_ra>
// kernel: tpu_custom_call.1
= control target key start
LH: loop header
LB: loop body
LE: loop exit
PB: predicated region body
PF: predicated region fallthrough
CT: control target
= control target key end

     0   :  { %8 = vsyncpa [#allocation3], 0  ;;  %s320_s0 = inlined_call_operand.hbm [shape: f32[16,32], index: 0, kind: input, shape index: {}]   ;;  %s321_s1 = inlined_call_operand.hbm [shape: bf16[32,32], index: 1, kind: input, shape index: {}]   ;;  %s322_s2 = inlined_call_operand.vmem [shape: f32[1,32], index: 2, kind: input, shape index: {}]   ;;  %s323_s3 = inlined_call_operand.hbm [shape: bf16[16,32], index: 3, kind: output, shape index: {}]  }
   0x1   :  { %9 = vsyncpa [#allocation6], 0 }
   0x2   :  { %10 = vsyncpa [#allocation4], 0  ;;  %s246_s12 = smov [#allocation2]   ;;  %s174_s16 = scalar_lea.hbm %s320_s0, 256 }
   0x3   :  { %s16_s13 = sshll.u32 %s246_s12, 4  ;;  %p175_p0 = scmp.ne.s32.totalorder %s320_s0, %s174_s16  ;;  %s17_s13 = int_to_ptr.vmem [resolvable:$true] %s16_s13 }
   0x4   :  { %p178_p1 = scmp.lt.u32.totalorder %s174_s16, %s320_s0 }
   0x6   :  { %p180_p2 = pnand %p178_p1, %p175_p0 }
   0x8   :  { %183 = shalt.err (!%p180_p2)
}
   0x9   :  { %s184_s21 = scalar_lea.vmem %s17_s13, 256  ;;  %p189_p4 = scmp.lt.s32.totalorder %s17_s13, %s17_s13 }
   0xa   :  { %p185_p3 = scmp.ne.s32.totalorder %s17_s13, %s184_s21  ;;  %p190_p5 = scmp.lt.s32.totalorder %s184_s21, %s184_s21 }
   0xc   :  { %p191_p6 = por %p190_p5, %p189_p4 }
   0xe   :  { %p192_p7 = pnand %p191_p6, %p185_p3 }
  0x10   :  { %195 = shalt.err (!%p192_p7)
}
  0x11   :  { %s247_s22 = smov 128   ;;  %s248_s23 = smov 8  }
  0x12   :  { %22 = dma.hbm_to_vmem [thread:$0]  %s320_s0, 256, %s17_s13, [#allocation3], %s247_s22, %s247_s22, %s248_s23  }
  0x13   :  { %s249_s26 = smov [#allocation5]   ;;  %s196_s30 = scalar_lea.hbm %s321_s1, 256 }
  0x14   :  { %s28_s27 = sshll.u32 %s249_s26, 4  ;;  %p197_p8 = scmp.ne.s32.totalorder %s321_s1, %s196_s30  ;;  %s29_s27 = int_to_ptr.vmem [resolvable:$true] %s28_s27 }
  0x15   :  { %p200_p9 = scmp.lt.u32.totalorder %s196_s30, %s321_s1 }
  0x17   :  { %p202_p10 = pnand %p200_p9, %p197_p8 }
  0x19   :  { %205 = shalt.err (!%p202_p10)
}
  0x1a   :  { %s206_s8 = scalar_lea.vmem %s29_s27, 256  ;;  %p211_p12 = scmp.lt.s32.totalorder %s29_s27, %s29_s27 }
  0x1b   :  { %p207_p11 = scmp.ne.s32.totalorder %s29_s27, %s206_s8  ;;  %p212_p13 = scmp.lt.s32.totalorder %s206_s8, %s206_s8 }
  0x1d   :  { %p213_p0 = por %p212_p13, %p211_p12 }
  0x1f   :  { %p214_p1 = pnand %p213_p0, %p207_p11 }
  0x21   :  { %217 = shalt.err (!%p214_p1)
}
  0x22   :  { %s250_s0 = smov 64   ;;  %s251_s9 = smov 4  }
  0x23   :  { %34 = dma.hbm_to_vmem [thread:$0]  %s321_s1, 256, %s29_s27, [#allocation6], %s250_s0, %s250_s0, %s251_s9  }
  0x24   :  { %240 = dma.done.wait [#allocation3], 256  }
  0x25   :  { %241 = vsyncadd [#allocation3], 4294967040 }
  0x26   :  { %242 = dma.done.wait [#allocation6], 256  }
  0x27   :  { %243 = vsyncadd [#allocation6], 4294967040  ;;  %v252_v0 = vmov 0.0   ;;  %vm253_vm0 = vmmov 0   ;;  %v172_v1 = vld [vmem:[#allocation5] sm:$0xff]   ;;  %v173_v2 = vld [vmem:[#allocation5 + $0x8] sm:$0xff]  }
  0x28   :  { %155 = vmatprep.subr.bf16.mxu0 %v252_v0  ;;  %159 = vmatprep.mubr.msk.bf16.mxu0 %vm253_vm0, %v252_v0  ;;  %v44_v3 = vld [vmem:[#allocation2] sm:$0xff]  ;;  %v45_v4 = vld [vmem:[#allocation2 + $0x8] sm:$0xff]  ;;  %vm70_vm1 = vcmask 261120   ;;  %vm123_vm2 = vcmask 257024   ;;  %s254_s13 = smov [#allocation7]  }
  0x29   :  { %156 = vmatpush3.bf16.msra.mxu0 %v172_v1  ;;  %v46_v5 = vpack.c.bf16 %v45_v4, %v44_v3  ;;  %v144_v6 = vld [vmem:[%s322_s2] ss:$0 sm:$0xff]  ;;  %s131_s14 = sshll.u32 %s254_s13, 4  ;;  %s132_s14 = int_to_ptr.vmem [resolvable:$true] %s131_s14 }
  0x2a   :  { %157 = vmatprep.subr.bf16.mxu0 %v252_v0  ;;  %s218_s15 = scalar_lea.vmem %s132_s14, 128  ;;  %p223_p3 = scmp.lt.s32.totalorder %s132_s14, %s132_s14 }
  0x2b   :  { %p219_p2 = scmp.ne.s32.totalorder %s132_s14, %s218_s15  ;;  %p224_p4 = scmp.lt.s32.totalorder %s218_s15, %s218_s15 }
  0x2d   :  { %158 = vmatpush3.bf16.msra.mxu0 %v173_v2  ;;  %p225_p5 = por %p224_p4, %p223_p3 }
  0x2f   :  { %p226_p6 = pnand %p225_p5, %p219_p2 }
  0x30   :  { %160 = vmatmul.mubr.msk.bf16.vlgmr.msra.gmra.mrb[0].mxu0 %vm70_vm1, %v46_v5 }
 0x103   :  { %v108_v7 = vpop.f32.mrb[0].mxu0 }
 0x104   :  { %v109_v8 = vadd.f32 %v144_v6, %v108_v7  ;;  %v161_v9 = vpop.f32.mrb[1].mxu0 }
 0x105   :  { %v111_v10 = vpop.f32.mrb[2].mxu0 }
 0x106   :  { %v150_v11 = vpack.c.bf16 %v109_v8, %v109_v8  ;;  %v112_v12 = vadd.f32 %v144_v6, %v111_v10  ;;  %v162_v13 = vpop.f32.mrb[3].mxu0 }
 0x108   :  { %v151_v14 = vpack.c.bf16 %v112_v12, %v112_v12  ;;  %124 = vst.msk [vmem:[#allocation7] sm:$0xf] %vm123_vm2, %v150_v11 }
 0x10a   :  { %125 = vst.msk [vmem:[#allocation7 + $0x4] sm:$0xf] %vm123_vm2, %v151_v14 }
 0x10b   :  { %229 = shalt.err (!%p226_p6)
}
 0x10c   :  { %s230_s17 = scalar_lea.hbm %s323_s3, 128 }
 0x10d   :  { %p231_p7 = scmp.ne.s32.totalorder %s323_s3, %s230_s17  ;;  %p234_p8 = scmp.lt.u32.totalorder %s230_s17, %s323_s3 }
 0x10f   :  { %p236_p9 = pnand %p234_p8, %p231_p7 }
 0x111   :  { %239 = shalt.err (!%p236_p9)
}
 0x112   :  { %137 = dma.vmem_to_hbm [thread:$0]  %s132_s14, 128, %s323_s3, [#allocation4], %s250_s0, %s250_s0, %s251_s9  }
 0x113   :  { %244 = dma.done.wait [#allocation4], 128  }
 0x114   :  { %245 = vsyncadd [#allocation4], 4294967168 }
 0x115   :  { %141 = vsyncpa [#allocation3], 1 }
 0x116   :  { %142 = vsyncpa [#allocation6], 1 }
 0x117   :  { %143 = vsyncpa [#allocation4], 1 }

</bundles_post_ra>
